<compile_context>
chip_gen: v7x
topology: tpu7x:2x2x1
jax: 0.10.0
libtpu: 0.0.40
codegen_flags: <defaults>
</compile_context>

<pallas_src>
import functools

import jax
import jax.numpy as jnp
from jax import lax
from jax.experimental import pallas as pl
from jax.experimental.pallas import tpu as pltpu

_HALO = 128  # lane-aligned halo width; covers any kernel_size <= 129


def _round_up(x, m):
    return ((x + m - 1) // m) * m


def _vmem_bytes(c_in, c_out, k, tl, itemsize):
    """Rough per-step VMEM residency (double-buffered I/O + in-kernel temporaries)."""
    db = 2
    n_in = db * c_in * (tl + 2 * _HALO) * itemsize
    n_out = db * c_out * tl * itemsize
    n_w = db * (c_out * k * c_in + c_out) * 4
    slab = c_in * (tl + 2 * _HALO) * 4
    stacked = k * c_in * tl * 4
    acc = c_out * tl * 4
    return n_in + n_out + n_w + slab + stacked + acc


def _choose_tile_l(L, c_in, c_out, k, itemsize, max_tile_l, vmem_budget=20 * 2**20):
    """Pick a lane tile (multiple of 128) minimizing padded work + per-step overhead."""
    hi = min(_round_up(L, 128), _round_up(max(max_tile_l, 128), 128))
    best_key, best_tl = None, 128
    tl = 128
    while tl <= hi:
        if _vmem_bytes(c_in, c_out, k, tl, itemsize) <= vmem_budget:
            n = -(-L // tl)
            key = (n * (tl + 128), -tl)      # fixed per-step cost ~ 128 lanes of work
            if best_key is None or key < best_key:
                best_key, best_tl = key, tl
        tl += 128
    return best_tl


def _conv1d_relu_kernel(xl_ref, xm_ref, xr_ref, w_ref, b_ref, o_ref, *,
                        L, K, pad_left):
    # xl_ref: (1, C_in, 128)  columns [j*TL-128, j*TL)          (garbage at j == 0)
    # xm_ref: (1, C_in, TL)   columns [j*TL, j*TL+TL)           (partial last tile)
    # xr_ref: (1, C_in, 128)  columns [(j+1)*TL, (j+1)*TL+128)  (clamped / partial)
    # w_ref : (C_out, K*C_in) im2col-packed weights (k-major, c-minor)
    # b_ref : (C_out, 1)      bias (f32)
    # o_ref : (1, C_out, TL)  output tile (lane-dense stores)
    j = pl.program_id(1)
    c_in, tl = xm_ref.shape[1], xm_ref.shape[2]
    halo = xl_ref.shape[2]
    width = tl + 2 * halo

    xl = xl_ref[0]
    xm = xm_ref[0]
    xr = xr_ref[0]

    # Zero-fill 'same' padding and stale/out-of-range lanes (cheap VPU selects;
    # exact zeros are required because edge taps read these lanes).
    lane_m = lax.broadcasted_iota(jnp.int32, (c_in, tl), 1)
    xm = jnp.where(lane_m < (L - j * tl), xm, jnp.zeros_like(xm))
    lane_h = lax.broadcasted_iota(jnp.int32, (c_in, halo), 1)
    xr = jnp.where(lane_h < (L - (j + 1) * tl), xr, jnp.zeros_like(xr))
    xl = jnp.where(j > 0, xl, jnp.zeros_like(xl))

    # Aligned slab: every tap window is a STATIC lane rotation of it (XLU slot),
    # never a misaligned or dynamic load.
    slab = jnp.concatenate([xl, xm, xr], axis=1)             # (C_in, TL + 256)

    windows = []
    for k in range(K):                                       # static, small K
        s = halo - pad_left + k                              # window start in slab
        if s % 128 == 0:
            win = slab[:, s:s + tl]                          # already lane-aligned
        else:
            win = pltpu.roll(slab, width - s, axis=1)[:, :tl]
        windows.append(win)
    stacked = jnp.concatenate(windows, axis=0)               # (K*C_in, TL)

    # Single im2col MXU dot (contraction K*C_in) instead of K tiny dots.
    acc = jnp.dot(w_ref[...], stacked, preferred_element_type=jnp.float32)
    acc = acc + b_ref[...]                                   # (C_out,1) broadcast
    o_ref[0] = jnp.maximum(acc, 0.0).astype(o_ref.dtype)


def epcot_conv_layer(x, weight, bias, *, max_tile_l=2048):
    """ReLU(Conv1d(x, weight, bias, padding='same')) in native NCL layout.

    x: (N, C_in, L); weight: (C_out, C_in, K); bias: (C_out,).
    Matches torch.nn.Conv1d(padding='same') (left pad = (K-1)//2) + ReLU.
    nn.Dropout is never applied in forward(), so it is omitted.
    """
    N, C_in, L_orig = x.shape
    C_out, C_in_w, K = weight.shape
    assert C_in_w == C_in and bias.shape == (C_out,)
    assert K - 1 <= _HALO, "kernel_size too large for the 128-lane halo"

    pad_left = (K - 1) // 2      # PyTorch 'same': left = (K-1)//2, right = rest

    # Degenerate short sequences: zero-pad L up to one 128-lane vreg (exact zeros,
    # so the first L_orig output columns are unchanged); slice back afterwards.
    if L_orig < 128:
        x = jnp.pad(x, ((0, 0), (0, 0), (0, 128 - L_orig)))
    L = x.shape[2]

    itemsize = jnp.dtype(x.dtype).itemsize
    TL = _choose_tile_l(L, C_in, C_out, K, itemsize, max_tile_l)
    nL = pl.cdiv(L, TL)
    tl128 = TL // 128
    last_lblk = pl.cdiv(L, 128) - 1

    # im2col weight packing: column index = k*C_in + c. Keep the activations'
    # dtype so bf16 inputs run the MXU at native rate (accumulation stays f32).
    w_pack = jnp.transpose(weight, (0, 2, 1)).reshape(C_out, K * C_in).astype(x.dtype)
    b_2d = bias.reshape(C_out, 1).astype(jnp.float32)

    kernel = functools.partial(_conv1d_relu_kernel, L=L, K=K, pad_left=pad_left)

    grid_spec = pltpu.PrefetchScalarGridSpec(
        num_scalar_prefetch=0,
        grid=(N, nL),
        in_specs=[
            # Left halo: the 128 columns ending at j*TL (clamped at j == 0;
            # zero-masked in the kernel).
            pl.BlockSpec((1, C_in, _HALO),
                         lambda n, j: (n, 0, jnp.maximum(j * tl128 - 1, 0))),
            # Main tile.
            pl.BlockSpec((1, C_in, TL), lambda n, j: (n, 0, j)),
            # Right halo: the 128 columns starting at (j+1)*TL (clamped to the
            # last in-bounds 128-block; invalid lanes zero-masked in the kernel).
            pl.BlockSpec((1, C_in, _HALO),
                         lambda n, j: (n, 0, jnp.minimum((j + 1) * tl128, last_lblk))),
            # Grid-invariant packed weights and bias (fetched once).
            pl.BlockSpec((C_out, K * C_in), lambda n, j: (0, 0)),
            pl.BlockSpec((C_out, 1), lambda n, j: (0, 0)),
        ],
        out_specs=pl.BlockSpec((1, C_out, TL), lambda n, j: (n, 0, j)),
    )

    vmem_est = _vmem_bytes(C_in, C_out, K, TL, itemsize)
    out = pl.pallas_call(
        kernel,
        out_shape=jax.ShapeDtypeStruct((N, C_out, L), x.dtype),
        grid_spec=grid_spec,
        compiler_params=pltpu.CompilerParams(
            # No carried state -> both axes parallel (v7x dual-TC can shard L tiles).
            dimension_semantics=("parallel", "parallel"),
            vmem_limit_bytes=int(min(max(2 * vmem_est, 16 * 2**20), 64 * 2**20)),
        ),
    )(x, x, x, w_pack, b_2d)

    if L != L_orig:
        out = out[:, :, :L_orig]
    return out


def _reference(x, weight, bias):
    # Pure-JAX reference: Conv1d with PyTorch-style 'same' padding + ReLU (NCL).
    K = weight.shape[2]
    pad_left = (K - 1) // 2
    y = lax.conv_general_dilated(
        x, weight, window_strides=(1,),
        padding=[(pad_left, (K - 1) - pad_left)],
        dimension_numbers=("NCH", "OIH", "NCH"))
    return jnp.maximum(y + bias[None, :, None], 0.0)


if __name__ == "__main__":
    cases = [
        # (N, C_in, C_out, L, K, max_tile_l)
        (2, 4, 8, 16, 5, 2048),     # tiny single-tile case (L < 128 path)
        (2, 4, 8, 1600, 10, 512),   # EPCOT-like length, even K, multi-tile + halos
        (1, 3, 6, 300, 3, 2048),    # odd channel counts, single 384-lane tile
    ]
    key = jax.random.PRNGKey(0)
    for (N, C_in, C_out, L, K, mtl) in cases:
        key, kx, kw, kb = jax.random.split(key, 4)
        x = jax.random.normal(kx, (N, C_in, L), dtype=jnp.float32)
        weight = jax.random.normal(kw, (C_out, C_in, K), dtype=jnp.float32) * 0.1
        bias = jax.random.normal(kb, (C_out,), dtype=jnp.float32) * 0.1

        out = jax.block_until_ready(epcot_conv_layer(x, weight, bias, max_tile_l=mtl))
        ref = jax.block_until_ready(_reference(x, weight, bias))
        assert out.shape == (N, C_out, L)
        scale = float(jnp.max(jnp.abs(ref))) + 1e-6
        err = float(jnp.max(jnp.abs(out - ref))) / scale
        # Loose tolerance: MXU default precision evaluates f32 matmuls via bf16 passes.
        assert err < 3e-2, f"case {(N, C_in, C_out, L, K)}: rel err {err}"
    print("KERNEL_OK")
</pallas_src>

<mosaic_0001>
module attributes {stable_mosaic.version = 11 : i64} {
  func.func @_conv1d_relu_kernel(%arg0: i32, %arg1: i32, %arg2: memref<1x4x128xf32, #tpu.memory_space<vmem>>, %arg3: memref<1x4x128xf32, #tpu.memory_space<vmem>>, %arg4: memref<1x4x128xf32, #tpu.memory_space<vmem>>, %arg5: memref<8x20xf32, #tpu.memory_space<vmem>>, %arg6: memref<8x1xf32, #tpu.memory_space<vmem>>, %arg7: memref<1x8x128xf32, #tpu.memory_space<vmem>>) attributes {dimension_semantics = [#tpu.dimension_semantics<parallel>, #tpu.dimension_semantics<parallel>], iteration_bounds = array<i64: 2, 1>, scalar_prefetch = 0 : i64, scratch_operands = 0 : i64, tpu.core_type = #tpu.core_type<tc>, window_params = [{transform_indices = @transform_0, window_bounds = array<i64: 1, 4, 128>}, {transform_indices = @transform_1, window_bounds = array<i64: 1, 4, 128>}, {transform_indices = @transform_2, window_bounds = array<i64: 1, 4, 128>}, {pipeline_mode = #tpu.pipeline_mode<synchronous>, transform_indices = @transform_3, window_bounds = array<i64: 8, 20>}, {pipeline_mode = #tpu.pipeline_mode<synchronous>, transform_indices = @transform_4, window_bounds = array<i64: 8, 1>}, {transform_indices = @transform_5, window_bounds = array<i64: 1, 8, 128>}]} {
    %c0 = arith.constant 0 : index
    %c0_0 = arith.constant 0 : index
    %c0_1 = arith.constant 0 : index
    %0 = vector.load %arg2[%c0, %c0_0, %c0_1] : memref<1x4x128xf32, #tpu.memory_space<vmem>>, vector<1x4x128xf32>
    %1 = vector.shape_cast %0 : vector<1x4x128xf32> to vector<4x128xf32>
    %c0_2 = arith.constant 0 : index
    %c0_3 = arith.constant 0 : index
    %c0_4 = arith.constant 0 : index
    %2 = vector.load %arg3[%c0_2, %c0_3, %c0_4] : memref<1x4x128xf32, #tpu.memory_space<vmem>>, vector<1x4x128xf32>
    %3 = vector.shape_cast %2 : vector<1x4x128xf32> to vector<4x128xf32>
    %c0_5 = arith.constant 0 : index
    %c0_6 = arith.constant 0 : index
    %c0_7 = arith.constant 0 : index
    %4 = vector.load %arg4[%c0_5, %c0_6, %c0_7] : memref<1x4x128xf32, #tpu.memory_space<vmem>>, vector<1x4x128xf32>
    %5 = vector.shape_cast %4 : vector<1x4x128xf32> to vector<4x128xf32>
    %6 = tpu.iota {dimensions = array<i32: 1>} : vector<4x128xi32>
    %c128_i32 = arith.constant 128 : i32
    %7 = arith.muli %arg1, %c128_i32 : i32
    %c128_i32_8 = arith.constant 128 : i32
    %8 = arith.subi %c128_i32_8, %7 : i32
    %9 = vector.broadcast %8 : i32 to vector<4x128xi32>
    %10 = arith.cmpi slt, %6, %9 : vector<4x128xi32>
    %cst = arith.constant 0.000000e+00 : f32
    %11 = vector.broadcast %cst : f32 to vector<4x128xf32>
    %12 = arith.select %10, %3, %11 : vector<4x128xi1>, vector<4x128xf32>
    %13 = tpu.iota {dimensions = array<i32: 1>} : vector<4x128xi32>
    %c1_i32 = arith.constant 1 : i32
    %14 = arith.addi %arg1, %c1_i32 : i32
    %c128_i32_9 = arith.constant 128 : i32
    %15 = arith.muli %14, %c128_i32_9 : i32
    %c128_i32_10 = arith.constant 128 : i32
    %16 = arith.subi %c128_i32_10, %15 : i32
    %17 = vector.broadcast %16 : i32 to vector<4x128xi32>
    %18 = arith.cmpi slt, %13, %17 : vector<4x128xi32>
    %cst_11 = arith.constant 0.000000e+00 : f32
    %19 = vector.broadcast %cst_11 : f32 to vector<4x128xf32>
    %20 = arith.select %18, %5, %19 : vector<4x128xi1>, vector<4x128xf32>
    %c0_i32 = arith.constant 0 : i32
    %21 = arith.cmpi sgt, %arg1, %c0_i32 : i32
    %cst_12 = arith.constant 0.000000e+00 : f32
    %22 = vector.broadcast %cst_12 : f32 to vector<4x128xf32>
    %23 = arith.select %21, %1, %22 : vector<4x128xf32>
    %24 = tpu.concatenate %23, %12, %20 in 1 : vector<4x128xf32>, vector<4x128xf32>, vector<4x128xf32> -> vector<4x384xf32>
    %c258_i32 = arith.constant 258 : i32
    %25 = tpu.dynamic_rotate %24 by %c258_i32 dim 1 : vector<4x384xf32>, i32 -> vector<4x384xf32>
    %26 = vector.extract_strided_slice %25 {offsets = [0, 0], sizes = [4, 128], strides = [1, 1]} : vector<4x384xf32> to vector<4x128xf32>
    %c257_i32 = arith.constant 257 : i32
    %27 = tpu.dynamic_rotate %24 by %c257_i32 dim 1 : vector<4x384xf32>, i32 -> vector<4x384xf32>
    %28 = vector.extract_strided_slice %27 {offsets = [0, 0], sizes = [4, 128], strides = [1, 1]} : vector<4x384xf32> to vector<4x128xf32>
    %29 = vector.extract_strided_slice %24 {offsets = [0, 128], sizes = [4, 128], strides = [1, 1]} : vector<4x384xf32> to vector<4x128xf32>
    %c255_i32 = arith.constant 255 : i32
    %30 = tpu.dynamic_rotate %24 by %c255_i32 dim 1 : vector<4x384xf32>, i32 -> vector<4x384xf32>
    %31 = vector.extract_strided_slice %30 {offsets = [0, 0], sizes = [4, 128], strides = [1, 1]} : vector<4x384xf32> to vector<4x128xf32>
    %c254_i32 = arith.constant 254 : i32
    %32 = tpu.dynamic_rotate %24 by %c254_i32 dim 1 : vector<4x384xf32>, i32 -> vector<4x384xf32>
    %33 = vector.extract_strided_slice %32 {offsets = [0, 0], sizes = [4, 128], strides = [1, 1]} : vector<4x384xf32> to vector<4x128xf32>
    %34 = tpu.concatenate %26, %28, %29, %31, %33 in 0 : vector<4x128xf32>, vector<4x128xf32>, vector<4x128xf32>, vector<4x128xf32>, vector<4x128xf32> -> vector<20x128xf32>
    %c0_13 = arith.constant 0 : index
    %c0_14 = arith.constant 0 : index
    %35 = vector.load %arg5[%c0_13, %c0_14] : memref<8x20xf32, #tpu.memory_space<vmem>>, vector<8x20xf32>
    %cst_15 = arith.constant dense<0.000000e+00> : vector<8x128xf32>
    %36 = tpu.matmul %35, %34, %cst_15 {dimension_numbers = #tpu.dot_dimension_numbers<[1], [0], [0], [1], [0, 0, 1, 1], [], []>} : vector<8x20xf32>, vector<20x128xf32>, vector<8x128xf32> -> vector<8x128xf32>
    %c0_16 = arith.constant 0 : index
    %c0_17 = arith.constant 0 : index
    %37 = vector.load %arg6[%c0_16, %c0_17] : memref<8x1xf32, #tpu.memory_space<vmem>>, vector<8x1xf32>
    %38 = vector.broadcast %37 : vector<8x1xf32> to vector<8x128xf32>
    %39 = arith.addf %36, %38 : vector<8x128xf32>
    %cst_18 = arith.constant 0.000000e+00 : f32
    %40 = vector.broadcast %cst_18 : f32 to vector<8x128xf32>
    %41 = arith.maximumf %39, %40 : vector<8x128xf32>
    %c0_19 = arith.constant 0 : index
    %c0_20 = arith.constant 0 : index
    %c0_21 = arith.constant 0 : index
    %42 = vector.load %arg7[%c0_19, %c0_20, %c0_21] : memref<1x8x128xf32, #tpu.memory_space<vmem>>, vector<1x8x128xf32>
    %43 = vector.shape_cast %42 : vector<1x8x128xf32> to vector<8x128xf32>
    %44 = vector.shape_cast %41 : vector<8x128xf32> to vector<1x8x128xf32>
    tpu.vector_store %arg7[%c0_19, %c0_20, %c0_21], %44 {strides = array<i32>} : memref<1x8x128xf32, #tpu.memory_space<vmem>>, vector<1x8x128xf32>,
    return
  }
  func.func @transform_0(%arg0: i32, %arg1: i32) -> (i32, i32, i32) {
    %c1_i32 = arith.constant 1 : i32
    %0 = arith.muli %arg1, %c1_i32 : i32
    %c1_i32_0 = arith.constant 1 : i32
    %1 = arith.subi %0, %c1_i32_0 : i32
    %c0_i32 = arith.constant 0 : i32
    %2 = arith.maxsi %1, %c0_i32 : i32
    %c0_i32_1 = arith.constant 0 : i32
    %c0_i32_2 = arith.constant 0 : i32
    return %arg0, %c0_i32_1, %2 : i32, i32, i32
  }
  func.func @transform_1(%arg0: i32, %arg1: i32) -> (i32, i32, i32) {
    %c0_i32 = arith.constant 0 : i32
    %c0_i32_0 = arith.constant 0 : i32
    return %arg0, %c0_i32, %arg1 : i32, i32, i32
  }
  func.func @transform_2(%arg0: i32, %arg1: i32) -> (i32, i32, i32) {
    %c1_i32 = arith.constant 1 : i32
    %0 = arith.addi %arg1, %c1_i32 : i32
    %c1_i32_0 = arith.constant 1 : i32
    %1 = arith.muli %0, %c1_i32_0 : i32
    %c0_i32 = arith.constant 0 : i32
    %2 = arith.minsi %1, %c0_i32 : i32
    %c0_i32_1 = arith.constant 0 : i32
    %c0_i32_2 = arith.constant 0 : i32
    return %arg0, %c0_i32_1, %2 : i32, i32, i32
  }
  func.func @transform_3(%arg0: i32, %arg1: i32) -> (i32, i32) {
    %c0_i32 = arith.constant 0 : i32
    %c0_i32_0 = arith.constant 0 : i32
    %c0_i32_1 = arith.constant 0 : i32
    return %c0_i32, %c0_i32_0 : i32, i32
  }
  func.func @transform_4(%arg0: i32, %arg1: i32) -> (i32, i32) {
    %c0_i32 = arith.constant 0 : i32
    %c0_i32_0 = arith.constant 0 : i32
    %c0_i32_1 = arith.constant 0 : i32
    return %c0_i32, %c0_i32_0 : i32, i32
  }
  func.func @transform_5(%arg0: i32, %arg1: i32) -> (i32, i32, i32) {
    %c0_i32 = arith.constant 0 : i32
    %c0_i32_0 = arith.constant 0 : i32
    return %arg0, %c0_i32, %arg1 : i32, i32, i32
  }
}

</mosaic_0001>

<bundles_post_ra>
// kernel: tpu_custom_call.1
= control target key start
LH: loop header
LB: loop body
LE: loop exit
PB: predicated region body
PF: predicated region fallthrough
CT: control target
= control target key end

     0   :  { %10 = vsyncpa [#allocation3], 0  ;;  %s1183_s0 = inlined_call_operand.vmem [shape: f32[2,4,128], index: 0, kind: input, shape index: {}]   ;;  %s1184_s1 = inlined_call_operand.hbm [shape: f32[2,4,128], index: 1, kind: input, shape index: {}]   ;;  %s1185_s2 = inlined_call_operand.vmem [shape: f32[2,4,128], index: 2, kind: input, shape index: {}]   ;;  %s1186_s3 = inlined_call_operand.hbm [shape: f32[8,20], index: 3, kind: input, shape index: {}]   ;;  %s1187_s4 = inlined_call_operand.vmem [shape: f32[8,1], index: 4, kind: input, shape index: {}]   ;;  %s1188_s5 = inlined_call_operand.hbm [shape: f32[2,8,128], index: 5, kind: output, shape index: {}]  }
   0x1   :  { %12 = vsyncpa [#allocation3 + $0x1], 0 }
   0x2   :  { %13 = vsyncpa [#allocation6], 0 }
   0x3   :  { %14 = vsyncpa [#allocation4], 0 }
   0x4   :  { %16 = vsyncpa [#allocation4 + $0x1], 0  ;;  %s963_s0 = smov 0   ;;  %s965_s18 = smov 0  }
   0x5   :  { %s967_s19 = smov 0   ;;  %s969_s2 = smov 0  }
   0x6   :  { %s971_s20 = smov 0   ;;  %s973_s21 = smov 0  }
   0x7 LB: > { %s643_s22 = sadd.s32 4294967295, %s920_s21   ;;  %s644_s23 = sadd.s32 4294967294, %s920_s21   ;;  %s920_s21 = sphi %s973_s21, %s22_s21   ;;  %s916_s20 = sphi %s971_s20, %s1213_s20   ;;  %s912_s2 = sphi %s969_s2, %s1212_s2   ;;  %s908_s19 = sphi %s967_s19, %s1211_s19   ;;  %s904_s18 = sphi %s965_s18, %s1210_s18   ;;  %s900_s0 = sphi %s963_s0, %s1209_s0  }
   0x8   : > { %p90_p0 = scmp.ne.s32.totalorder %s904_s18, %s900_s0  ;;  %p997_p1 = scmp.eq.s32.totalorder %s643_s22, 0 }
   0x9   : > { %p1001_p2 = scmp.eq.s32.totalorder %s643_s22, 1  ;;  %p198_p3 = scmp.eq.s32.totalorder %s644_s23, 1 }
   0xa   : > { %s1193_s24 = scalar_select %p997_p1, 1, 0 }
   0xb   : > { %s1194_s25 = scalar_select %p1001_p2, 1, 0 }
   0xc   : > { %p1007_p4 = por %p997_p1, %p90_p0  ;;  %p645_p5 = scmp.ge.s32.totalorder %s920_s21, 1 }
   0xd   : > { %p1012_p6 = por %p198_p3, %p90_p0  ;;  %p205_p7 = scmp.lt.s32.totalorder %s920_s21, 3 }
   0xe   : > { %s1195_s26 = scalar_select %p1007_p4, 1, 0 }
   0xf   : > { %s1196_s27 = scalar_select %p1012_p6, 1, 0 }
  0x10   : > { %p1017_p8 = pnand %p645_p5, %p205_p7  ;;  %s922_s29 = smov [#allocation5]  }
  0x11   : > { %s218_s30 = sshll.u32 %s922_s29, 4  ;;  %s34_s7 = sadd.s32 1, %s916_s20  ;;  %s219_s30 = int_to_ptr.vmem [resolvable:$true] %s218_s30 }
  0x12   : > { %s1197_s28 = scalar_select %p1017_p8, 1, 0 }
  0x13   : > { %p686_p10 = pneg %p1017_p8  ;;  %s77_s8 = sadd.s32 1, %s908_s19 }
  0x14   : > { %p1032_p12 = scmp.ge.s32.totalorder %s34_s7, 2  ;;  %s776_s12 = scalar_lea.hbm %s1186_s3, 128 }
  0x15   : > { %p1026_p11 = pnand %p686_p10, %p997_p1  ;;  %p777_p13 = scmp.ne.s32.totalorder %s1186_s3, %s776_s12 }
  0x16   : > { %s1199_s9 = scalar_select %p1032_p12, 1, 0 }
  0x17   : > { %p778_p0 = pneg %p1026_p11  ;;  %p783_p7 = scmp.lt.u32.totalorder %s776_s12, %s1186_s3 }
  0x19   : > { %p779_p3 = pnand %p778_p0, %p777_p13 }
  0x1b   : > { %p780_p5 = pneg %p779_p3 }
  0x1d   : > { %p785_p10 = pnand %p783_p7, %p780_p5 }
  0x1f   : > { %788 = shalt.err (!%p785_p10)
}
  0x20   : > { %s789_s17 = scalar_lea.vmem %s219_s30, 128  ;;  %p797_p4 = scmp.lt.s32.totalorder %s219_s30, %s219_s30 }
  0x21   : > { %p790_p9 = scmp.ne.s32.totalorder %s219_s30, %s789_s17  ;;  %p798_p8 = scmp.lt.s32.totalorder %s789_s17, %s789_s17 }
  0x23   : > { %p792_p6 = pnand %p790_p9, %p778_p0  ;;  %p799_p2 = por %p798_p8, %p797_p4 }
  0x25   : > { %p793_p1 = pneg %p792_p6 }
  0x27   : > { %p800_p12 = pnand %p799_p2, %p793_p1 }
  0x29   : > { %803 = shalt.err (!%p800_p12)
}
  0x2a   : > { %689 = dma.hbm_to_vmem [thread:$0]  (!%p1026_p11), %s1186_s3, 128, %s219_s30, [#allocation6]  }
  0x2b   : > { %p1200_p4 = scmp.ne.s32.totalorder %s1199_s9, 0  ;;  %p84_p1 = scmp.ne.s32.totalorder %s908_s19, %s904_s18 }
  0x2c   : > { %p85_p2 = scmp.eq.s32.totalorder %s920_s21, 0  ;;  %p699_p6 = scmp.lt.s32.totalorder %s920_s21, 2 }
  0x2d   : > { %s1215_s7 = smov (%p1200_p4, %s34_s7), 0  ;;  %p1201_p12 = scmp.ne.s32.totalorder %s1194_s25, 0 }
  0x2e   : > { %s72_s29 = ssub.s32 %s916_s20, %s1215_s7  ;;  %p86_p9 = por %p85_p2, %p84_p1 }
  0x2f   : > { %p75_p8 = scmp.eq.s32.totalorder %s72_s29, 0  ;;  %p1064_p13 = por %p1201_p12, %p84_p1 }
  0x30   : > { %s248_s10 = sand.u32 1, %s908_s19   ;;  %s649_s9 = sshll.u32 %s916_s20, 6 }
  0x31   : > { %s1072_s11 = scalar_select %p75_p8, %s908_s19, %s77_s8  }
  0x32   : > { %s648_s30 = sshll.u32 %s248_s10, 2  ;;  %s1078_s14 = scalar_lea.hbm %s1184_s1, %s649_s9 }
  0x33   : > { %s252_s25 = scalar_lea.vmem [#allocation2], %s648_s30  ;;  %p1082_p11 = pnand %p699_p6, %p86_p9 }
  0x34   : > { %s260_s15 = sshll.u32 %s252_s25, 4  ;;  %s249_s8 = scalar_lea.sflag [#allocation3], %s248_s10  ;;  %s1080_s15 = int_to_ptr.vmem [resolvable:$true] %s260_s15 }
  0x35   : > { %s804_s17 = scalar_lea.hbm %s1078_s14, 64  ;;  %p806_p3 = pneg %p1082_p11 }
  0x36   : > { %p805_p0 = scmp.ne.s32.totalorder %s1078_s14, %s804_s17  ;;  %s809_s29 = scalar_lea.hbm %s1184_s1, 128 }
  0x37   : > { %p810_p10 = scmp.lt.u32.totalorder %s1078_s14, %s1184_s1  ;;  %p811_p4 = scmp.lt.u32.totalorder %s809_s29, %s804_s17 }
  0x38   : > { %p807_p5 = pnand %p806_p3, %p805_p0  ;;  %p813_p2 = scmp.lt.u32.totalorder %s804_s17, %s1078_s14 }
  0x39   : > { %p812_p1 = por %p811_p4, %p810_p10 }
  0x3a   : > { %p808_p7 = pneg %p807_p5 }
  0x3b   : > { %p814_p6 = por %p813_p2, %p812_p1 }
  0x3d   : > { %p815_p8 = pnand %p814_p6, %p808_p7 }
  0x3f   : > { %818 = shalt.err (!%p815_p8)
}
  0x40   : > { %s819_s10 = scalar_lea.vmem %s1080_s15, 64  ;;  %s923_s12 = smov [#allocation2]  }
  0x41   : > { %p820_p9 = scmp.ne.s32.totalorder %s1080_s15, %s819_s10  ;;  %s824_s13 = sshll.u32 %s923_s12, 4  ;;  %s825_s13 = int_to_ptr.vmem [resolvable:$false] %s824_s13 }
  0x42   : > { %s826_s25 = scalar_lea.vmem %s825_s13, 128  ;;  %p827_p5 = scmp.lt.s32.totalorder %s1080_s15, %s825_s13 }
  0x43   : > { %p822_p12 = pnand %p820_p9, %p806_p3  ;;  %p828_p10 = scmp.lt.s32.totalorder %s826_s25, %s819_s10 }
  0x45   : > { %p823_p0 = pneg %p822_p12  ;;  %p829_p4 = por %p828_p10, %p827_p5 }
  0x47   : > { %p830_p1 = pnand %p829_p4, %p823_p0 }
  0x49   : > { %833 = shalt.err (!%p830_p1)
}
  0x4a   : > { %693 = dma.hbm_to_vmem [thread:$0]  (!%p1082_p11), %s1078_s14, 64, %s1080_s15, %s249_s8  }
  0x4b   : > { %p1204_p7 = scmp.ne.s32.totalorder %s1197_s28, 0 }
  0x4c   : > { %s1114_s17 = sand.u32 (!%p1204_p7), 1, %s904_s18   ;;  %p1205_p3 = scmp.ne.s32.totalorder (!%p1204_p7), %s1195_s26, 0 }
  0x4d   : > { %285 = sbr.rel (%p1204_p7) target bundleno = 453 (0x1c5), region = 40  ;;  %s651_s22 = sshll.u32 (!%p1204_p7), %s1114_s17, 2 }
  0x4e   : > { %s288_s23 = scalar_lea.sflag (!%p1204_p7), [#allocation3], %s1114_s17  ;;  %s291_s29 = scalar_lea.vmem (!%p1204_p7), [#allocation2], %s651_s22 }
  0x54   : > { %887 = dma.done.wait (%p1205_p3), %s288_s23, 64  }
  0x55   : > { %889 = vsyncadd (%p1205_p3), %s288_s23, 4294967232  ;;  %p1206_p2 = scmp.ne.s32.totalorder %s1193_s24, 0 }
  0x57   : > { %891 = dma.done.wait (%p1206_p2), [#allocation6], 128  }
  0x58   : > { %893 = vsyncadd (%p1206_p2), [#allocation6], 4294967168  ;;  %v924_v0 = vmov 0.0|0.0   ;;  %v369_v1 = vld [vmem:[%s291_s29] sm:$0xf]  ;;  %v925_v2 = vmov 0.0   ;;  %v371_v7 = vlaneseq }
  0x59   : > { %675 = vmatprep.subr.bf16.mxu0 %v924_v0  ;;  %v759_v3 = vpack.i.bf16 %v369_v1, %v925_v2  ;;  %s926_s28 = smov 1   ;;  %s927_s14 = smov 2   ;;  %v764_v4 = vpack.i.bf16 %v925_v2, %v369_v1  ;;  %vm928_vm0 = vmmov 0   ;;  %v931_v5 = vmov 0   ;;  %v423_v6 = vld [vmem:[%s1187_s4] sm:$0xff]  ;;  %v422_v29 = vld [vmem:[#allocation5] sm:$0xff] }
  0x5a   : > { %672 = vmatprep.mubr.msk.f32.mxu0 %vm928_vm0, %v925_v2  ;;  %s929_s26 = smov 127   ;;  %s930_s15 = smov 126   ;;  %774 = vset.pattern.permute.xlu1 %v931_v5  ;;  %v372_v8 = vand.u32 127, %v371_v7  ;;  %vm419_vm4 = vcmask 1043456   ;;  %vm429_vm6 = vcmask 162816  }
  0x5b   : > { %760 = vrot.lane.b32.xlu0 %v759_v3, %s926_s28  ;;  %770 = vrot.lane.b32.xlu1 %v759_v3, %s927_s14  ;;  %s653_s8 = sshll.u32 %s1114_s17, 3  ;;  %s659_s30 = sshll.u32 %s912_s2, 7 }
  0x5c   : > { %775 = vset.pattern.permute.xlu0 %v931_v5  ;;  %vm399_vm1 = vcmp.lt.s32.totalorder %v372_v8, 1  ;;  %vm405_vm2 = vcmp.lt.s32.totalorder %v372_v8, 127  ;;  %vm393_vm3 = vcmp.lt.s32.totalorder %v372_v8, 2  ;;  %vm411_vm5 = vcmp.lt.s32.totalorder %v372_v8, 126  ;;  %s341_s9 = scalar_lea.vmem [#allocation7], %s653_s8  ;;  %s1134_s25 = scalar_lea.hbm %s1188_s5, %s659_s30 }
  0x5d   : > { %s523_s10 = sshll.u32 %s341_s9, 4  ;;  %s509_s22 = scalar_lea.sflag [#allocation4], %s1114_s17  ;;  %s1136_s10 = int_to_ptr.vmem [resolvable:$true] %s523_s10 }
  0x5e   : > { %s834_s23 = scalar_lea.vmem %s1136_s10, 128  ;;  %s932_s2 = smov [#allocation7]  }
  0x5f   : > { %765 = vrot.lane.b32.xlu0 %v764_v4, %s929_s26  ;;  %407 = vrot.lane.b32.xlu1 %v369_v1, %s930_s15  ;;  %p835_p11 = scmp.ne.s32.totalorder %s1136_s10, %s834_s23  ;;  %s838_s29 = sshll.u32 %s932_s2, 4  ;;  %s839_s29 = int_to_ptr.vmem [resolvable:$false] %s838_s29 }
  0x60   : > { %s840_s28 = scalar_lea.vmem %s839_s29, 256  ;;  %p841_p9 = scmp.lt.s32.totalorder %s1136_s10, %s839_s29 }
  0x61   : > { %p836_p6 = pnand %p835_p11, %p1064_p13  ;;  %p842_p12 = scmp.lt.s32.totalorder %s840_s28, %s834_s23 }
  0x63   : > { %409 = vrot.lane.b32.xlu0 %v925_v2, %s930_s15  ;;  %426 = vperm.xlu1 %774, %v423_v6   ;;  %p837_p8 = pneg %p836_p6  ;;  %p843_p0 = por %p842_p12, %p841_p9 }
  0x65   : > { %p844_p5 = pnand %p843_p0, %p837_p8 }
  0xcd   : > { %v761_v9 = vpop.permute.xlu0 %760  ;;  %v771_v10 = vpop.permute.xlu1 %770 }
  0xce   : > { %v763_v11 = vunpack.i.h.bf16 %v761_v9  ;;  %v762_v12 = vunpack.i.l.bf16 %v761_v9  ;;  %v773_v14 = vunpack.i.h.bf16 %v771_v10  ;;  %v772_v15 = vunpack.i.l.bf16 %v771_v10 }
  0xd0   : > { %v400_v13 = vsel %vm399_vm1, %v762_v12, %v763_v11  ;;  %v394_v21 = vsel %vm393_vm3, %v772_v15, %v773_v14 }
  0xd1   : > { %v766_v16 = vpop.permute.xlu0 %765  ;;  %v414_v19 = vrot.slane %v400_v13, 4  ;;  %v408_v26 = vpop.permute.xlu1 %407 }
  0xd2   : > { %v768_v17 = vunpack.i.h.bf16 %v766_v16  ;;  %v767_v18 = vunpack.i.l.bf16 %v766_v16 }
  0xd3   : > { %v420_v23 = vsel %vm419_vm4, %v394_v21, %v414_v19 }
  0xd4   : > { %v406_v20 = vsel %vm405_vm2, %v767_v18, %v768_v17 }
  0xd5   : > { %v417_v22 = vrot.slane %v406_v20, 4  ;;  %v410_v27 = vpop.permute.xlu0 %409 }
  0xd6   : > { %v412_v28 = vsel %vm411_vm5, %v408_v26, %v410_v27 }
  0xd7   : > { %v421_v24 = vsel %vm419_vm4, %v369_v1, %v417_v22 }
  0xd8   : > { %v676_v25 = vpack.c.bf16 %v421_v24, %v420_v23 }
  0xda   : > { %677 = vmatpush3.bf16.msra.mxu0 %v676_v25 }
  0xdb   : > { %670 = vmatprep.subr.mxu0 %v925_v2 }
  0xde   : > { %671 = vmatpush3.msk.msra.mxu0 %vm419_vm4, %v412_v28 }
  0xdf   : > { %673 = vmatmul.mubr.msk.f32.vlgmr.msra.gmra.mrb[0].mxu0 %vm429_vm6, %v422_v29 }
  0xe2   : > { %v427_v30 = vpop.permute.xlu1 %426 }
 0x1b2   : > { %v502_v31 = vpop.f32.mrb[0].mxu0 }
 0x1b3   : > { %v503_v32 = vadd.f32 %v502_v31, %v427_v30  ;;  %v674_v33 = vpop.f32.mrb[1].mxu0 }
 0x1b5   : > { %v506_v34 = vmax.f32 %v503_v32, 0.0 }
 0x1b7   : > { %507 = vst [vmem:[%s341_s9] sm:$0xff] %v506_v34 }
 0x1b8   : > { %847 = shalt.err (!%p844_p5)
}
 0x1b9   : > { %s848_s17 = scalar_lea.hbm %s1134_s25, 128  ;;  %s852_s15 = scalar_lea.hbm %s1188_s5, 256 }
 0x1ba   : > { %p849_p10 = scmp.ne.s32.totalorder %s1134_s25, %s848_s17  ;;  %p853_p7 = scmp.lt.u32.totalorder %s1134_s25, %s1188_s5 }
 0x1bb   : > { %p854_p3 = scmp.lt.u32.totalorder %s852_s15, %s848_s17  ;;  %p856_p11 = scmp.lt.u32.totalorder %s848_s17, %s1134_s25 }
 0x1bc   : > { %p850_p4 = pnand %p849_p10, %p1064_p13 }
 0x1bd   : > { %p855_p2 = por %p854_p3, %p853_p7 }
 0x1be   : > { %p851_p1 = pneg %p850_p4 }
 0x1bf   : > { %p857_p6 = por %p856_p11, %p855_p2 }
 0x1c1   : > { %p858_p8 = pnand %p857_p6, %p851_p1 }
 0x1c3   : > { %861 = shalt.err (!%p858_p8)
}
 0x1c4   : > { %684 = dma.vmem_to_hbm [thread:$0]  (%p1064_p13), %s1136_s10, 128, %s1134_s25, %s509_s22  }
 0x1c5 PF: > { %s535_s8 = sand.u32 1, %s900_s0   ;;  %p1207_p9 = scmp.ne.s32.totalorder %s1196_s27, 0 }
 0x1c6   : > { %p1208_p12 = scmp.ge.s32.totalorder %s920_s21, 2  ;;  %s536_s30 = scalar_lea.sflag [#allocation4], %s535_s8 }
 0x1c8   : > { %p695_p0 = pnand %p1208_p12, %p1207_p9 }
 0x1ca   : > { %895 = dma.done.wait (!%p695_p0), %s536_s30, 128  }
 0x1cb   : > { %897 = vsyncadd (!%p695_p0), %s536_s30, 4294967168  ;;  %s22_s21 = sadd.s32 1, %s920_s21   ;;  %s1209_s0 = smov %s904_s18 }
 0x1cc   : > { %p19_p5 = scmp.ge.s32.totalorder %s22_s21, 4   ;;  %s1210_s18 = smov %s908_s19 }
 0x1cd   : > { %s1211_s19 = smov %s1072_s11  ;;  %s1212_s2 = smov %s916_s20 }
 0x1ce   : > { %s1213_s20 = smov %s1215_s7  ;;  %21 = sbr.rel (!%p19_p5) target bundleno = 7 (0x7), region = 95 }
 0x1d5   :  { %541 = vsyncpa [#allocation3], 1 }
 0x1d6   :  { %543 = vsyncpa [#allocation3 + $0x1], 1 }
 0x1d7   :  { %544 = vsyncpa [#allocation6], 1 }
 0x1d8   :  { %545 = vsyncpa [#allocation4], 1 }
 0x1d9   :  { %547 = vsyncpa [#allocation4 + $0x1], 1 }

</bundles_post_ra>
